<compile_context>
chip_gen: v7x
topology: tpu7x:2x2x1
jax: 0.10.0
libtpu: 0.0.40
codegen_flags: <defaults>
</compile_context>

<pallas_src>
import jax
import jax.numpy as jnp
from jax import lax
from jax.experimental import pallas as pl
from jax.experimental.pallas import tpu as pltpu


def _patch_embed_kernel(patches_ref, w_ref, pos_ref, cls_ref, o_ref):
    """One grid step = TB batch elements.

    patches_ref: (TB*N, K)       flattened patches, rows grouped per batch elem.
    w_ref:       (K, Epad)       conv weight as matmul RHS (zero-padded cols).
    pos_ref:     (N, Epad)       position embedding rows 1..N, float32.
    cls_ref:     (1, Epad)       class_token + position embedding row 0, float32.
    o_ref:       (TB, N+1, Epad) output block.
    """
    tb, n_plus_1, _ = o_ref.shape
    n = n_plus_1 - 1
    # Single large MXU matmul for all TB*N patch rows of this step (f32 accum).
    emb = jnp.dot(patches_ref[...], w_ref[...],
                  preferred_element_type=jnp.float32)           # (TB*N, Epad) f32
    pos = pos_ref[...]                                           # f32, hoisted
    cls_row = cls_ref[...].astype(o_ref.dtype)                   # (1, Epad)
    for b in range(tb):                                          # static unroll, TB small
        o_ref[b, 0:1, :] = cls_row
        o_ref[b, 1:, :] = (emb[b * n:(b + 1) * n, :] + pos).astype(o_ref.dtype)


def _choose_tb(B, N, K, Epad, in_bytes, out_bytes,
               target_rows=512, vmem_budget=40 << 20):
    """How many batch elements to block per grid step.

    Budgets 2x (double buffer) for every operand -- including the constant-index
    weight / bias blocks -- so the tile fits v7x's 64 MiB VMEM with headroom.
    """
    fixed = 2 * K * Epad * in_bytes + 2 * (N + 1) * Epad * 4     # weight + pos/cls

    def fits(d):
        per = 2 * d * N * K * in_bytes + 2 * d * (N + 1) * Epad * out_bytes
        return fixed + per <= vmem_budget

    def aligned(d):                                              # sublane (8) rule
        return (d * N) % 8 == 0 or d == B

    divisors = [d for d in range(1, B + 1) if B % d == 0]
    good = [d for d in divisors if aligned(d) and fits(d)] or [1]
    under = [d for d in good if d * N <= target_rows]
    tb = max(under) if under else min(good)
    # Keep >= 2 grid steps when B allows it (v7x has 2 TensorCores).
    if B >= 2 and B // tb < 2:
        smaller = [d for d in good if B // d >= 2]
        if smaller:
            tb = max(smaller)
    return tb


def patch_embedding(x, conv_w, class_token, pos_embed, patch_size, *,
                    compute_dtype=jnp.bfloat16, target_rows=512,
                    allow_input_fusion=True):
    """x: (B, C, H, W); conv_w: (E, C, P, P); class_token: (1, 1, E);
    pos_embed: (1, N+1, E).  Returns (B, N+1, E) in x.dtype.

    Note: output dtype follows x.dtype; with bf16 inputs the f32 epilogue is
    rounded to bf16 on store (minor deviation from the torch f32 reference).
    """
    B, C, H, W = x.shape
    P = patch_size
    assert H % P == 0 and W % P == 0, "image size must be divisible by patch size"
    Hp, Wp = H // P, W // P
    N = Hp * Wp
    E = conv_w.shape[0]
    K = C * P * P
    out_dtype = x.dtype
    Epad = ((E + 127) // 128) * 128      # lane-dense stores need last dim % 128 == 0

    # ---- layout plumbing (no compute). Under jit, allow_input_fusion lets XLA
    # fuse this transpose/cast into the kernel operand DMA instead of
    # materialising `patches` in HBM. -----------------------------------------
    patches = x.reshape(B, C, Hp, P, Wp, P)
    patches = patches.transpose(0, 2, 4, 1, 3, 5).reshape(B * N, K)
    patches = patches.astype(compute_dtype)

    w_mat = conv_w.reshape(E, K).T.astype(compute_dtype)         # (K, E): y = x @ W
    pos = pos_embed.reshape(N + 1, E).astype(jnp.float32)
    cls_row = pos[0:1, :] + class_token.reshape(1, E).astype(jnp.float32)
    pos_patch = pos[1:, :]                                       # (N, E)
    if Epad != E:
        w_mat = jnp.pad(w_mat, ((0, 0), (0, Epad - E)))
        pos_patch = jnp.pad(pos_patch, ((0, 0), (0, Epad - E)))
        cls_row = jnp.pad(cls_row, ((0, 0), (0, Epad - E)))

    TB = _choose_tb(B, N, K, Epad,
                    jnp.dtype(compute_dtype).itemsize,
                    jnp.dtype(out_dtype).itemsize,
                    target_rows=target_rows)

    grid_spec = pltpu.PrefetchScalarGridSpec(
        num_scalar_prefetch=0,
        grid=(B // TB,),
        in_specs=[
            pl.BlockSpec((TB * N, K), lambda i: (i, 0)),         # streamed patch rows
            pl.BlockSpec((K, Epad), lambda i: (0, 0)),           # weight (VMEM-resident)
            pl.BlockSpec((N, Epad), lambda i: (0, 0)),           # pos rows 1..N (f32)
            pl.BlockSpec((1, Epad), lambda i: (0, 0)),           # cls + pos row 0 (f32)
        ],
        out_specs=pl.BlockSpec((TB, N + 1, Epad), lambda i: (i, 0, 0)),
    )
    # NOTE: constant-index weight/bias blocks are still double-buffered by
    # default; they are budgeted at 2x in _choose_tb instead of using Buffered(1).
    compiler_params = pltpu.CompilerParams(
        dimension_semantics=("parallel",),
        vmem_limit_bytes=48 * 1024 * 1024,          # > 32 MiB default, < v7x 64 MiB
        allow_input_fusion=([True, False, False, False]
                            if allow_input_fusion else None),
    )
    out = pl.pallas_call(
        _patch_embed_kernel,
        out_shape=jax.ShapeDtypeStruct((B, N + 1, Epad), out_dtype),
        grid_spec=grid_spec,
        compiler_params=compiler_params,
    )(patches, w_mat, pos_patch, cls_row)

    if Epad != E:
        out = out[:, :, :E]
    return out


if __name__ == "__main__":
    image_size, patch_size, in_channels, embed_dim = 16, 4, 4, 32
    B = 2
    N = (image_size // patch_size) ** 2                          # 16 patches

    key = jax.random.PRNGKey(0)
    kx, kw, kp = jax.random.split(key, 3)
    x = jax.random.normal(kx, (B, in_channels, image_size, image_size), jnp.float32)
    conv_w = jax.random.normal(
        kw, (embed_dim, in_channels, patch_size, patch_size), jnp.float32) * 0.05
    class_token = jnp.zeros((1, 1, embed_dim), jnp.float32)       # torch init: zeros
    pos_embed = jax.random.normal(kp, (1, N + 1, embed_dim), jnp.float32)

    def run(fuse):
        fn = jax.jit(lambda a, w, c, p: patch_embedding(
            a, w, c, p, patch_size, allow_input_fusion=fuse))
        return jax.block_until_ready(fn(x, conv_w, class_token, pos_embed))

    try:
        out = run(True)
    except Exception:
        # Conservative fallback if the compiler rejects operand fusion.
        out = run(False)

    # Pure-JAX f32 reference (validates patch ordering, cls row, pos-embed add).
    # Tolerance accounts for bf16 matmul operands (accumulation stays f32).
    ref = lax.conv_general_dilated(
        x, conv_w, window_strides=(patch_size, patch_size), padding="VALID",
        dimension_numbers=("NCHW", "OIHW", "NCHW"))
    ref = ref.reshape(B, embed_dim, N).transpose(0, 2, 1)
    ref = jnp.concatenate(
        [jnp.broadcast_to(class_token, (B, 1, embed_dim)), ref], axis=1)
    ref = ref + pos_embed

    assert out.shape == (B, N + 1, embed_dim) and out.dtype == jnp.float32
    assert bool(jnp.all(jnp.isfinite(out)))
    err = float(jnp.max(jnp.abs(out - ref)))
    assert bool(jnp.allclose(out, ref, atol=2e-2, rtol=2e-2)), err
    print("KERNEL_OK")
</pallas_src>

<mosaic_0001>
module attributes {stable_mosaic.version = 11 : i64} {
  func.func @_patch_embed_kernel(%arg0: i32, %arg1: memref<16x64xbf16, #tpu.memory_space<vmem>>, %arg2: memref<64x128xbf16, #tpu.memory_space<vmem>>, %arg3: memref<16x128xf32, #tpu.memory_space<vmem>>, %arg4: memref<1x128xf32, #tpu.memory_space<vmem>>, %arg5: memref<1x17x128xf32, #tpu.memory_space<vmem>>) attributes {dimension_semantics = [#tpu.dimension_semantics<parallel>], iteration_bounds = array<i64: 2>, scalar_prefetch = 0 : i64, scratch_operands = 0 : i64, tpu.core_type = #tpu.core_type<tc>, window_params = [{transform_indices = @transform_0, window_bounds = array<i64: 16, 64>}, {pipeline_mode = #tpu.pipeline_mode<synchronous>, transform_indices = @transform_1, window_bounds = array<i64: 64, 128>}, {pipeline_mode = #tpu.pipeline_mode<synchronous>, transform_indices = @transform_2, window_bounds = array<i64: 16, 128>}, {pipeline_mode = #tpu.pipeline_mode<synchronous>, transform_indices = @transform_3, window_bounds = array<i64: 1, 128>}, {transform_indices = @transform_4, window_bounds = array<i64: 1, 17, 128>}]} {
    %c0 = arith.constant 0 : index
    %c0_0 = arith.constant 0 : index
    %0 = vector.load %arg1[%c0, %c0_0] : memref<16x64xbf16, #tpu.memory_space<vmem>>, vector<16x64xbf16>
    %c0_1 = arith.constant 0 : index
    %c0_2 = arith.constant 0 : index
    %1 = vector.load %arg2[%c0_1, %c0_2] : memref<64x128xbf16, #tpu.memory_space<vmem>>, vector<64x128xbf16>
    %cst = arith.constant dense<0.000000e+00> : vector<16x128xf32>
    %2 = tpu.matmul %0, %1, %cst {dimension_numbers = #tpu.dot_dimension_numbers<[1], [0], [0], [1], [0, 0, 1, 1], [], []>} : vector<16x64xbf16>, vector<64x128xbf16>, vector<16x128xf32> -> vector<16x128xf32>
    %c0_3 = arith.constant 0 : index
    %c0_4 = arith.constant 0 : index
    %3 = vector.load %arg3[%c0_3, %c0_4] : memref<16x128xf32, #tpu.memory_space<vmem>>, vector<16x128xf32>
    %c0_5 = arith.constant 0 : index
    %c0_6 = arith.constant 0 : index
    %4 = vector.load %arg4[%c0_5, %c0_6] : memref<1x128xf32, #tpu.memory_space<vmem>>, vector<1x128xf32>
    %c0_7 = arith.constant 0 : index
    %c0_8 = arith.constant 0 : index
    %c0_9 = arith.constant 0 : index
    %5 = vector.load %arg5[%c0_7, %c0_8, %c0_9] : memref<1x17x128xf32, #tpu.memory_space<vmem>>, vector<1x1x128xf32>
    %6 = vector.shape_cast %5 : vector<1x1x128xf32> to vector<1x128xf32>
    %7 = vector.shape_cast %4 : vector<1x128xf32> to vector<1x1x128xf32>
    tpu.vector_store %arg5[%c0_7, %c0_8, %c0_9], %7 {strides = array<i32>} : memref<1x17x128xf32, #tpu.memory_space<vmem>>, vector<1x1x128xf32>,
    %8 = arith.addf %2, %3 : vector<16x128xf32>
    %c0_10 = arith.constant 0 : index
    %c1 = arith.constant 1 : index
    %c0_11 = arith.constant 0 : index
    %9 = vector.load %arg5[%c0_10, %c1, %c0_11] : memref<1x17x128xf32, #tpu.memory_space<vmem>>, vector<1x16x128xf32>
    %10 = vector.shape_cast %9 : vector<1x16x128xf32> to vector<16x128xf32>
    %11 = vector.shape_cast %8 : vector<16x128xf32> to vector<1x16x128xf32>
    tpu.vector_store %arg5[%c0_10, %c1, %c0_11], %11 {strides = array<i32>} : memref<1x17x128xf32, #tpu.memory_space<vmem>>, vector<1x16x128xf32>,
    return
  }
  func.func @transform_0(%arg0: i32) -> (i32, i32) {
    %c0_i32 = arith.constant 0 : i32
    %c0_i32_0 = arith.constant 0 : i32
    return %arg0, %c0_i32 : i32, i32
  }
  func.func @transform_1(%arg0: i32) -> (i32, i32) {
    %c0_i32 = arith.constant 0 : i32
    %c0_i32_0 = arith.constant 0 : i32
    %c0_i32_1 = arith.constant 0 : i32
    return %c0_i32, %c0_i32_0 : i32, i32
  }
  func.func @transform_2(%arg0: i32) -> (i32, i32) {
    %c0_i32 = arith.constant 0 : i32
    %c0_i32_0 = arith.constant 0 : i32
    %c0_i32_1 = arith.constant 0 : i32
    return %c0_i32, %c0_i32_0 : i32, i32
  }
  func.func @transform_3(%arg0: i32) -> (i32, i32) {
    %c0_i32 = arith.constant 0 : i32
    %c0_i32_0 = arith.constant 0 : i32
    %c0_i32_1 = arith.constant 0 : i32
    return %c0_i32, %c0_i32_0 : i32, i32
  }
  func.func @transform_4(%arg0: i32) -> (i32, i32, i32) {
    %c0_i32 = arith.constant 0 : i32
    %c0_i32_0 = arith.constant 0 : i32
    %c0_i32_1 = arith.constant 0 : i32
    return %arg0, %c0_i32, %c0_i32_0 : i32, i32, i32
  }
}

module attributes {stable_mosaic.version = 11 : i64} {
  func.func @_patch_embed_kernel(%arg0: i32, %arg1: memref<16x64xbf16, #tpu.memory_space<vmem>>, %arg2: memref<64x128xbf16, #tpu.memory_space<vmem>>, %arg3: memref<16x128xf32, #tpu.memory_space<vmem>>, %arg4: memref<1x128xf32, #tpu.memory_space<vmem>>, %arg5: memref<1x17x128xf32, #tpu.memory_space<vmem>>) attributes {dimension_semantics = [#tpu.dimension_semantics<parallel>], iteration_bounds = array<i64: 2>, scalar_prefetch = 0 : i64, scratch_operands = 0 : i64, tpu.core_type = #tpu.core_type<tc>, window_params = [{transform_indices = @transform_0, window_bounds = array<i64: 16, 64>}, {pipeline_mode = #tpu.pipeline_mode<synchronous>, transform_indices = @transform_1, window_bounds = array<i64: 64, 128>}, {pipeline_mode = #tpu.pipeline_mode<synchronous>, transform_indices = @transform_2, window_bounds = array<i64: 16, 128>}, {pipeline_mode = #tpu.pipeline_mode<synchronous>, transform_indices = @transform_3, window_bounds = array<i64: 1, 128>}, {transform_indices = @transform_4, window_bounds = array<i64: 1, 17, 128>}]} {
    %c0 = arith.constant 0 : index
    %c0_0 = arith.constant 0 : index
    %0 = vector.load %arg1[%c0, %c0_0] : memref<16x64xbf16, #tpu.memory_space<vmem>>, vector<16x64xbf16>
    %c0_1 = arith.constant 0 : index
    %c0_2 = arith.constant 0 : index
    %1 = vector.load %arg2[%c0_1, %c0_2] : memref<64x128xbf16, #tpu.memory_space<vmem>>, vector<64x128xbf16>
    %cst = arith.constant dense<0.000000e+00> : vector<16x128xf32>
    %2 = tpu.matmul %0, %1, %cst {dimension_numbers = #tpu.dot_dimension_numbers<[1], [0], [0], [1], [0, 0, 1, 1], [], []>} : vector<16x64xbf16>, vector<64x128xbf16>, vector<16x128xf32> -> vector<16x128xf32>
    %c0_3 = arith.constant 0 : index
    %c0_4 = arith.constant 0 : index
    %3 = vector.load %arg3[%c0_3, %c0_4] : memref<16x128xf32, #tpu.memory_space<vmem>>, vector<16x128xf32>
    %c0_5 = arith.constant 0 : index
    %c0_6 = arith.constant 0 : index
    %4 = vector.load %arg4[%c0_5, %c0_6] : memref<1x128xf32, #tpu.memory_space<vmem>>, vector<1x128xf32>
    %c0_7 = arith.constant 0 : index
    %c0_8 = arith.constant 0 : index
    %c0_9 = arith.constant 0 : index
    %5 = vector.load %arg5[%c0_7, %c0_8, %c0_9] : memref<1x17x128xf32, #tpu.memory_space<vmem>>, vector<1x1x128xf32>
    %6 = vector.shape_cast %5 : vector<1x1x128xf32> to vector<1x128xf32>
    %7 = vector.shape_cast %4 : vector<1x128xf32> to vector<1x1x128xf32>
    tpu.vector_store %arg5[%c0_7, %c0_8, %c0_9], %7 {strides = array<i32>} : memref<1x17x128xf32, #tpu.memory_space<vmem>>, vector<1x1x128xf32>,
    %8 = arith.addf %2, %3 : vector<16x128xf32>
    %c0_10 = arith.constant 0 : index
    %c1 = arith.constant 1 : index
    %c0_11 = arith.constant 0 : index
    %9 = vector.load %arg5[%c0_10, %c1, %c0_11] : memref<1x17x128xf32, #tpu.memory_space<vmem>>, vector<1x16x128xf32>
    %10 = vector.shape_cast %9 : vector<1x16x128xf32> to vector<16x128xf32>
    %11 = vector.shape_cast %8 : vector<16x128xf32> to vector<1x16x128xf32>
    tpu.vector_store %arg5[%c0_10, %c1, %c0_11], %11 {strides = array<i32>} : memref<1x17x128xf32, #tpu.memory_space<vmem>>, vector<1x16x128xf32>,
    return
  }
  func.func @transform_0(%arg0: i32) -> (i32, i32) {
    %c0_i32 = arith.constant 0 : i32
    %c0_i32_0 = arith.constant 0 : i32
    return %arg0, %c0_i32 : i32, i32
  }
  func.func @transform_1(%arg0: i32) -> (i32, i32) {
    %c0_i32 = arith.constant 0 : i32
    %c0_i32_0 = arith.constant 0 : i32
    %c0_i32_1 = arith.constant 0 : i32
    return %c0_i32, %c0_i32_0 : i32, i32
  }
  func.func @transform_2(%arg0: i32) -> (i32, i32) {
    %c0_i32 = arith.constant 0 : i32
    %c0_i32_0 = arith.constant 0 : i32
    %c0_i32_1 = arith.constant 0 : i32
    return %c0_i32, %c0_i32_0 : i32, i32
  }
  func.func @transform_3(%arg0: i32) -> (i32, i32) {
    %c0_i32 = arith.constant 0 : i32
    %c0_i32_0 = arith.constant 0 : i32
    %c0_i32_1 = arith.constant 0 : i32
    return %c0_i32, %c0_i32_0 : i32, i32
  }
  func.func @transform_4(%arg0: i32) -> (i32, i32, i32) {
    %c0_i32 = arith.constant 0 : i32
    %c0_i32_0 = arith.constant 0 : i32
    %c0_i32_1 = arith.constant 0 : i32
    return %arg0, %c0_i32, %c0_i32_0 : i32, i32, i32
  }
}

</mosaic_0001>

<bundles_post_ra>
// kernel: _lambda_.1
= control target key start
LH: loop header
LB: loop body
LE: loop exit
PB: predicated region body
PF: predicated region fallthrough
CT: control target
= control target key end

     0   :  { %s430_s15 = smov 0   ;;  %s468_s0 = inlined_call_operand.vmem [shape: bf16[32,64], index: 0, kind: input, shape index: {}]   ;;  %s469_s1 = inlined_call_operand.vmem [shape: bf16[64,128], index: 1, kind: input, shape index: {}]   ;;  %s470_s2 = inlined_call_operand.vmem [shape: f32[16,128], index: 2, kind: input, shape index: {}]   ;;  %s471_s3 = inlined_call_operand.vmem [shape: f32[1,128], index: 3, kind: input, shape index: {}]   ;;  %s472_s4 = inlined_call_operand.vmem [shape: f32[2,17,128], index: 4, kind: output, shape index: {}]  }
   0x1 LB: > { %s346_s16 = sadd.s32 4294967295, %s401_s15   ;;  %p350_p0 = scmp.ge.s32.totalorder %s401_s15, 1  ;;  %s401_s15 = sphi %s430_s15, %s14_s15  }
   0x2   : > { %p163_p1 = scmp.lt.s32.totalorder %s401_s15, 3 }
   0x4   : > { %p164_p2 = pnand %p350_p0, %p163_p1 }
   0x5   : > { %v390_v0 = vld [vmem:[%s469_s1] sm:$0xff] (!%p164_p2)   ;;  %v403_v1 = vmov (!%p164_p2), 0.0   ;;  %v391_v2 = vld [vmem:[%s469_s1 + $0x8] sm:$0xff] (!%p164_p2)   ;;  %vm404_vm0 = vmmov (!%p164_p2), 0   ;;  %s351_s21 = sshll.u32 (!%p164_p2), %s346_s16, 1  ;;  %p195_p4 = scmp.lt.s32.totalorder (!%p164_p2), %s346_s16, 1 }
   0x6   : > { %167 = sbr.rel (%p164_p2) target bundleno = 239 (0xef), region = 36  ;;  %367 = vmatprep.subr.bf16.mxu0 (!%p164_p2), %v403_v1  ;;  %375 = vmatprep.mubr.msk.bf16.mxu0 (!%p164_p2), %vm404_vm0, %v403_v1  ;;  %p190_p3 = scmp.lt.s32.totalorder (!%p164_p2), %s351_s21, 3  ;;  %v392_v3 = vld [vmem:[%s469_s1 + $0x10] sm:$0xff] (!%p164_p2)   ;;  %v213_v4 = vld [vmem:[%s471_s3] sm:$0x1] (!%p164_p2)  ;;  %v393_v5 = vld [vmem:[%s469_s1 + $0x18] sm:$0xff] (!%p164_p2)  }
   0x7   : > { %368 = vmatpush3.bf16.msra.mxu0 (!%p164_p2), %v390_v0  ;;  %vm244_vm1 = vcmask (!%p164_p2), 523264   ;;  %v211_v7 = vld [vmem:[%s470_s2] sm:$0xff] (!%p164_p2)  ;;  %v212_v9 = vld [vmem:[%s470_s2 + $0x8] sm:$0xff] (!%p164_p2) }
   0x8   : > { %369 = vmatprep.subr.bf16.mxu0 (!%p164_p2), %v403_v1 }
   0xb   : > { %370 = vmatpush3.bf16.msra.mxu0 (!%p164_p2), %v391_v2 }
   0xc   : > { %371 = vmatprep.subr.bf16.mxu0 (!%p164_p2), %v403_v1 }
   0xd   : > { %s474_s21 = smov (!%p190_p3, %s351_s21), 3  ;;  %s476_s16 = smov (!%p195_p4, %s346_s16), 1 }
   0xe   : > { %s352_s24 = sshll.u32 %s474_s21, 2  ;;  %s379_s28 = smul.u32 24, %s476_s16 }
   0xf   : > { %s193_s27 = scalar_lea.vmem %s468_s0, %s352_s24  ;;  %372 = vmatpush3.bf16.msra.mxu0 %v392_v3 }
  0x10   : > { %s199_s9 = scalar_lea.vmem %s472_s4, %s379_s28  ;;  %373 = vmatprep.subr.bf16.mxu0 %v403_v1  ;;  %v394_v6 = vld [vmem:[%s193_s27] sm:$0xff]  }
  0x11   : > { %214 = vst [vmem:[%s199_s9] sm:$0x1] %v213_v4 }
  0x13   : > { %374 = vmatpush3.bf16.msra.mxu0 %v393_v5 }
  0x16   : > { %376 = vmatmul.mubr.msk.bf16.vlgmr.msra.gmra.mrb[0].mxu0 %vm244_vm1, %v394_v6 }
  0xe9   : > { %v282_v8 = vpop.f32.mrb[0].mxu0 }
  0xea   : > { %v283_v10 = vadd.f32 %v282_v8, %v211_v7  ;;  %v377_v11 = vpop.f32.mrb[1].mxu0 }
  0xeb   : > { %v285_v12 = vpop.f32.mrb[2].mxu0 }
  0xec   : > { %289 = vst [vmem:[%s199_s9 + $0x1] sm:$0xff] %v283_v10  ;;  %v286_v13 = vadd.f32 %v285_v12, %v212_v9  ;;  %v378_v14 = vpop.f32.mrb[3].mxu0 }
  0xee   : > { %290 = vst [vmem:[%s199_s9 + $0x9] sm:$0xff] %v286_v13 }
  0xef PF: > { %s14_s15 = sadd.s32 1, %s401_s15  }
  0xf0   : > { %p11_p5 = scmp.ge.s32.totalorder %s14_s15, 4  }
  0xf2   :  { %13 = sbr.rel (!%p11_p5) target bundleno = 1 (0x1), region = 66 }

// kernel: _lambda_.1
= control target key start
LH: loop header
LB: loop body
LE: loop exit
PB: predicated region body
PF: predicated region fallthrough
CT: control target
= control target key end

     0   :  { %s430_s15 = smov 0   ;;  %s468_s0 = inlined_call_operand.vmem [shape: bf16[32,64], index: 0, kind: input, shape index: {}]   ;;  %s469_s1 = inlined_call_operand.vmem [shape: bf16[64,128], index: 1, kind: input, shape index: {}]   ;;  %s470_s2 = inlined_call_operand.vmem [shape: f32[16,128], index: 2, kind: input, shape index: {}]   ;;  %s471_s3 = inlined_call_operand.vmem [shape: f32[1,128], index: 3, kind: input, shape index: {}]   ;;  %s472_s4 = inlined_call_operand.vmem [shape: f32[2,17,128], index: 4, kind: output, shape index: {}]  }
   0x1 LB: > { %s346_s16 = sadd.s32 4294967295, %s401_s15   ;;  %p350_p0 = scmp.ge.s32.totalorder %s401_s15, 1  ;;  %s401_s15 = sphi %s430_s15, %s14_s15  }
   0x2   : > { %p163_p1 = scmp.lt.s32.totalorder %s401_s15, 3 }
   0x4   : > { %p164_p2 = pnand %p350_p0, %p163_p1 }
   0x5   : > { %v390_v0 = vld [vmem:[%s469_s1] sm:$0xff] (!%p164_p2)   ;;  %v403_v1 = vmov (!%p164_p2), 0.0   ;;  %v391_v2 = vld [vmem:[%s469_s1 + $0x8] sm:$0xff] (!%p164_p2)   ;;  %vm404_vm0 = vmmov (!%p164_p2), 0   ;;  %s351_s21 = sshll.u32 (!%p164_p2), %s346_s16, 1  ;;  %p195_p4 = scmp.lt.s32.totalorder (!%p164_p2), %s346_s16, 1 }
   0x6   : > { %167 = sbr.rel (%p164_p2) target bundleno = 239 (0xef), region = 36  ;;  %367 = vmatprep.subr.bf16.mxu0 (!%p164_p2), %v403_v1  ;;  %375 = vmatprep.mubr.msk.bf16.mxu0 (!%p164_p2), %vm404_vm0, %v403_v1  ;;  %p190_p3 = scmp.lt.s32.totalorder (!%p164_p2), %s351_s21, 3  ;;  %v392_v3 = vld [vmem:[%s469_s1 + $0x10] sm:$0xff] (!%p164_p2)   ;;  %v213_v4 = vld [vmem:[%s471_s3] sm:$0x1] (!%p164_p2)  ;;  %v393_v5 = vld [vmem:[%s469_s1 + $0x18] sm:$0xff] (!%p164_p2)  }
   0x7   : > { %368 = vmatpush3.bf16.msra.mxu0 (!%p164_p2), %v390_v0  ;;  %vm244_vm1 = vcmask (!%p164_p2), 523264   ;;  %v211_v7 = vld [vmem:[%s470_s2] sm:$0xff] (!%p164_p2)  ;;  %v212_v9 = vld [vmem:[%s470_s2 + $0x8] sm:$0xff] (!%p164_p2) }
   0x8   : > { %369 = vmatprep.subr.bf16.mxu0 (!%p164_p2), %v403_v1 }
   0xb   : > { %370 = vmatpush3.bf16.msra.mxu0 (!%p164_p2), %v391_v2 }
   0xc   : > { %371 = vmatprep.subr.bf16.mxu0 (!%p164_p2), %v403_v1 }
   0xd   : > { %s474_s21 = smov (!%p190_p3, %s351_s21), 3  ;;  %s476_s16 = smov (!%p195_p4, %s346_s16), 1 }
   0xe   : > { %s352_s24 = sshll.u32 %s474_s21, 2  ;;  %s379_s28 = smul.u32 24, %s476_s16 }
   0xf   : > { %s193_s27 = scalar_lea.vmem %s468_s0, %s352_s24  ;;  %372 = vmatpush3.bf16.msra.mxu0 %v392_v3 }
  0x10   : > { %s199_s9 = scalar_lea.vmem %s472_s4, %s379_s28  ;;  %373 = vmatprep.subr.bf16.mxu0 %v403_v1  ;;  %v394_v6 = vld [vmem:[%s193_s27] sm:$0xff]  }
  0x11   : > { %214 = vst [vmem:[%s199_s9] sm:$0x1] %v213_v4 }
  0x13   : > { %374 = vmatpush3.bf16.msra.mxu0 %v393_v5 }
  0x16   : > { %376 = vmatmul.mubr.msk.bf16.vlgmr.msra.gmra.mrb[0].mxu0 %vm244_vm1, %v394_v6 }
  0xe9   : > { %v282_v8 = vpop.f32.mrb[0].mxu0 }
  0xea   : > { %v283_v10 = vadd.f32 %v282_v8, %v211_v7  ;;  %v377_v11 = vpop.f32.mrb[1].mxu0 }
  0xeb   : > { %v285_v12 = vpop.f32.mrb[2].mxu0 }
  0xec   : > { %289 = vst [vmem:[%s199_s9 + $0x1] sm:$0xff] %v283_v10  ;;  %v286_v13 = vadd.f32 %v285_v12, %v212_v9  ;;  %v378_v14 = vpop.f32.mrb[3].mxu0 }
  0xee   : > { %290 = vst [vmem:[%s199_s9 + $0x9] sm:$0xff] %v286_v13 }
  0xef PF: > { %s14_s15 = sadd.s32 1, %s401_s15  }
  0xf0   : > { %p11_p5 = scmp.ge.s32.totalorder %s14_s15, 4  }
  0xf2   :  { %13 = sbr.rel (!%p11_p5) target bundleno = 1 (0x1), region = 66 }

</bundles_post_ra>
